<compile_context>
chip_gen: v7x
topology: tpu7x:2x2x1
jax: 0.10.0
libtpu: 0.0.40
codegen_flags: <defaults>
</compile_context>

<pallas_src>
import jax
import jax.numpy as jnp
from jax.experimental import pallas as pl
from jax.experimental.pallas import tpu as pltpu


def mlp_kernel(x_ref,
               w1_ref, b1_ref,
               w2_ref, b2_ref,
               w3_ref, b3_ref,
               w4_ref, b4_ref,
               o_ref):
    # x_ref: (9, TB) bf16 ; w*_ref: (out, in) bf16 ; b*_ref: (out, 1) f32 ; o_ref: (2, TB) f32
    x = x_ref[...]

    # fc1 + ReLU
    h = jnp.dot(w1_ref[...], x, preferred_element_type=jnp.float32) + b1_ref[...]
    h = jnp.maximum(h, 0.0)

    # fc2 + ReLU
    h = jnp.dot(w2_ref[...], h.astype(jnp.bfloat16),
                preferred_element_type=jnp.float32) + b2_ref[...]
    h = jnp.maximum(h, 0.0)

    # dropout1 (p=0.1) -> identity at inference time
    # fc3 + ReLU
    h = jnp.dot(w3_ref[...], h.astype(jnp.bfloat16),
                preferred_element_type=jnp.float32) + b3_ref[...]
    h = jnp.maximum(h, 0.0)

    # fc4 + softmax(dim=-1) over 2 classes == sigmoid of the logit difference (EUP op)
    logits = jnp.dot(w4_ref[...], h.astype(jnp.bfloat16),
                     preferred_element_type=jnp.float32) + b4_ref[...]
    p1 = jax.nn.sigmoid(logits[1:2, :] - logits[0:1, :])   # (1, TB)
    o_ref[0:1, :] = (1.0 - p1).astype(o_ref.dtype)
    o_ref[1:2, :] = p1.astype(o_ref.dtype)


def mymodule13_forward(x, params, *, max_tb=1024):
    """x: (B, 9) float32.  params: PyTorch-style weights (out, in) and biases (out,)."""
    B = x.shape[0]
    assert x.shape[1] == 9

    lane = 128
    b_pad = max(lane, pl.cdiv(B, lane) * lane)     # lane-align the batch
    tb = min(b_pad, max_tb)                        # batch tile (multiple of 128)
    b_pad = pl.cdiv(b_pad, tb) * tb                # make divisible by the tile
    grid = (b_pad // tb,)

    # Batch on the lane axis; bf16 halves the only large HBM stream (x).
    x_t = jnp.pad(x, ((0, b_pad - B), (0, 0))).T.astype(jnp.bfloat16)       # (9, b_pad)

    w1 = params["w1"].astype(jnp.bfloat16)   # (25, 9)
    w2 = params["w2"].astype(jnp.bfloat16)   # (25, 25)
    w3 = params["w3"].astype(jnp.bfloat16)   # (25, 25)
    w4 = params["w4"].astype(jnp.bfloat16)   # (2, 25)
    b1 = params["b1"].reshape(25, 1).astype(jnp.float32)
    b2 = params["b2"].reshape(25, 1).astype(jnp.float32)
    b3 = params["b3"].reshape(25, 1).astype(jnp.float32)
    b4 = params["b4"].reshape(2, 1).astype(jnp.float32)

    const_map = lambda i: (0, 0)                   # weights/biases: VMEM-resident
    batch_map = lambda i: (0, i)                   # x / out: tile along the lane axis

    in_specs = [
        pl.BlockSpec((9, tb), batch_map),
        pl.BlockSpec((25, 9), const_map),  pl.BlockSpec((25, 1), const_map),
        pl.BlockSpec((25, 25), const_map), pl.BlockSpec((25, 1), const_map),
        pl.BlockSpec((25, 25), const_map), pl.BlockSpec((25, 1), const_map),
        pl.BlockSpec((2, 25), const_map),  pl.BlockSpec((2, 1), const_map),
    ]
    out_spec = pl.BlockSpec((2, tb), batch_map)

    flops = 2 * b_pad * (9 * 25 + 25 * 25 + 25 * 25 + 25 * 2)
    weight_bytes = (w1.size + w2.size + w3.size + w4.size) * 2 \
        + (b1.size + b2.size + b3.size + b4.size) * 4
    bytes_accessed = x_t.size * 2 + b_pad * 2 * 4 + weight_bytes
    cost = pl.CostEstimate(flops=flops, transcendentals=b_pad,
                           bytes_accessed=bytes_accessed)

    out_t = pl.pallas_call(
        mlp_kernel,
        out_shape=jax.ShapeDtypeStruct((2, b_pad), jnp.float32),
        grid=grid,
        in_specs=in_specs,
        out_specs=out_spec,
        compiler_params=pltpu.CompilerParams(
            dimension_semantics=("parallel",),
            vmem_limit_bytes=32 * 1024 * 1024,
        ),
        cost_estimate=cost,
    )(x_t, w1, b1, w2, b2, w3, b3, w4, b4)

    return out_t.T[:B]                              # back to (B, 2)


def init_params(key):
    """PyTorch-style params: weight (out, in) xavier-uniform, bias (out,) = 0."""
    def xavier_uniform(k, fan_out, fan_in):
        limit = (6.0 / (fan_in + fan_out)) ** 0.5
        return jax.random.uniform(k, (fan_out, fan_in), jnp.float32, -limit, limit)

    k1, k2, k3, k4 = jax.random.split(key, 4)
    return {
        "w1": xavier_uniform(k1, 25, 9),  "b1": jnp.zeros((25,), jnp.float32),
        "w2": xavier_uniform(k2, 25, 25), "b2": jnp.zeros((25,), jnp.float32),
        "w3": xavier_uniform(k3, 25, 25), "b3": jnp.zeros((25,), jnp.float32),
        "w4": xavier_uniform(k4, 2, 25),  "b4": jnp.zeros((2,), jnp.float32),
    }


def reference_forward(x, p):
    """Same math in plain JAX with identical bf16 casts (f32 accumulation)."""
    def dense(h, w, b):
        return jnp.dot(h.astype(jnp.bfloat16), w.astype(jnp.bfloat16).T,
                       preferred_element_type=jnp.float32) + b
    h = jax.nn.relu(dense(x, p["w1"], p["b1"]))
    h = jax.nn.relu(dense(h, p["w2"], p["b2"]))
    h = jax.nn.relu(dense(h, p["w3"], p["b3"]))
    logits = dense(h, p["w4"], p["b4"])
    return jax.nn.softmax(logits, axis=-1)


if __name__ == "__main__":
    key = jax.random.PRNGKey(0)
    kx, kp = jax.random.split(key)
    B = 8
    x = jax.random.normal(kx, (B, 9), jnp.float32)   # batch=8, in_features=9
    params = init_params(kp)

    out = jax.block_until_ready(mymodule13_forward(x, params))
    ref = reference_forward(x, params)

    assert out.shape == (B, 2)
    assert jnp.allclose(jnp.sum(out, axis=-1), 1.0, atol=1e-5), "softmax rows must sum to 1"
    assert jnp.allclose(out, ref, atol=1e-3, rtol=1e-3), "mismatch vs reference"

    print("KERNEL_OK")
</pallas_src>

<mosaic_0001>
module attributes {stable_mosaic.version = 11 : i64} {
  func.func @mlp_kernel(%arg0: i32, %arg1: memref<9x128xbf16, #tpu.memory_space<vmem>>, %arg2: memref<25x9xbf16, #tpu.memory_space<vmem>>, %arg3: memref<25x1xf32, #tpu.memory_space<vmem>>, %arg4: memref<25x25xbf16, #tpu.memory_space<vmem>>, %arg5: memref<25x1xf32, #tpu.memory_space<vmem>>, %arg6: memref<25x25xbf16, #tpu.memory_space<vmem>>, %arg7: memref<25x1xf32, #tpu.memory_space<vmem>>, %arg8: memref<2x25xbf16, #tpu.memory_space<vmem>>, %arg9: memref<2x1xf32, #tpu.memory_space<vmem>>, %arg10: memref<2x128xf32, #tpu.memory_space<vmem>>) attributes {dimension_semantics = [#tpu.dimension_semantics<parallel>], iteration_bounds = array<i64: 1>, scalar_prefetch = 0 : i64, scratch_operands = 0 : i64, tpu.core_type = #tpu.core_type<tc>, window_params = [{transform_indices = @transform_0, window_bounds = array<i64: 9, 128>}, {pipeline_mode = #tpu.pipeline_mode<synchronous>, transform_indices = @transform_1, window_bounds = array<i64: 25, 9>}, {pipeline_mode = #tpu.pipeline_mode<synchronous>, transform_indices = @transform_2, window_bounds = array<i64: 25, 1>}, {pipeline_mode = #tpu.pipeline_mode<synchronous>, transform_indices = @transform_3, window_bounds = array<i64: 25, 25>}, {pipeline_mode = #tpu.pipeline_mode<synchronous>, transform_indices = @transform_4, window_bounds = array<i64: 25, 1>}, {pipeline_mode = #tpu.pipeline_mode<synchronous>, transform_indices = @transform_5, window_bounds = array<i64: 25, 25>}, {pipeline_mode = #tpu.pipeline_mode<synchronous>, transform_indices = @transform_6, window_bounds = array<i64: 25, 1>}, {pipeline_mode = #tpu.pipeline_mode<synchronous>, transform_indices = @transform_7, window_bounds = array<i64: 2, 25>}, {pipeline_mode = #tpu.pipeline_mode<synchronous>, transform_indices = @transform_8, window_bounds = array<i64: 2, 1>}, {transform_indices = @transform_9, window_bounds = array<i64: 2, 128>}]} {
    %c0 = arith.constant 0 : index
    %c0_0 = arith.constant 0 : index
    %0 = vector.load %arg1[%c0, %c0_0] : memref<9x128xbf16, #tpu.memory_space<vmem>>, vector<9x128xbf16>
    %c0_1 = arith.constant 0 : index
    %c0_2 = arith.constant 0 : index
    %1 = vector.load %arg2[%c0_1, %c0_2] : memref<25x9xbf16, #tpu.memory_space<vmem>>, vector<25x9xbf16>
    %cst = arith.constant dense<0.000000e+00> : vector<25x128xf32>
    %2 = tpu.matmul %1, %0, %cst {dimension_numbers = #tpu.dot_dimension_numbers<[1], [0], [0], [1], [0, 0, 1, 1], [], []>} : vector<25x9xbf16>, vector<9x128xbf16>, vector<25x128xf32> -> vector<25x128xf32>
    %c0_3 = arith.constant 0 : index
    %c0_4 = arith.constant 0 : index
    %3 = vector.load %arg3[%c0_3, %c0_4] : memref<25x1xf32, #tpu.memory_space<vmem>>, vector<25x1xf32>
    %4 = vector.broadcast %3 : vector<25x1xf32> to vector<25x128xf32>
    %5 = arith.addf %2, %4 : vector<25x128xf32>
    %cst_5 = arith.constant 0.000000e+00 : f32
    %6 = vector.broadcast %cst_5 : f32 to vector<25x128xf32>
    %7 = arith.maximumf %5, %6 : vector<25x128xf32>
    %c0_6 = arith.constant 0 : index
    %c0_7 = arith.constant 0 : index
    %8 = vector.load %arg4[%c0_6, %c0_7] : memref<25x25xbf16, #tpu.memory_space<vmem>>, vector<25x25xbf16>
    %9 = arith.truncf %7 : vector<25x128xf32> to vector<25x128xbf16>
    %cst_8 = arith.constant dense<0.000000e+00> : vector<25x128xf32>
    %10 = tpu.matmul %8, %9, %cst_8 {dimension_numbers = #tpu.dot_dimension_numbers<[1], [0], [0], [1], [0, 0, 1, 1], [], []>} : vector<25x25xbf16>, vector<25x128xbf16>, vector<25x128xf32> -> vector<25x128xf32>
    %c0_9 = arith.constant 0 : index
    %c0_10 = arith.constant 0 : index
    %11 = vector.load %arg5[%c0_9, %c0_10] : memref<25x1xf32, #tpu.memory_space<vmem>>, vector<25x1xf32>
    %12 = vector.broadcast %11 : vector<25x1xf32> to vector<25x128xf32>
    %13 = arith.addf %10, %12 : vector<25x128xf32>
    %cst_11 = arith.constant 0.000000e+00 : f32
    %14 = vector.broadcast %cst_11 : f32 to vector<25x128xf32>
    %15 = arith.maximumf %13, %14 : vector<25x128xf32>
    %c0_12 = arith.constant 0 : index
    %c0_13 = arith.constant 0 : index
    %16 = vector.load %arg6[%c0_12, %c0_13] : memref<25x25xbf16, #tpu.memory_space<vmem>>, vector<25x25xbf16>
    %17 = arith.truncf %15 : vector<25x128xf32> to vector<25x128xbf16>
    %cst_14 = arith.constant dense<0.000000e+00> : vector<25x128xf32>
    %18 = tpu.matmul %16, %17, %cst_14 {dimension_numbers = #tpu.dot_dimension_numbers<[1], [0], [0], [1], [0, 0, 1, 1], [], []>} : vector<25x25xbf16>, vector<25x128xbf16>, vector<25x128xf32> -> vector<25x128xf32>
    %c0_15 = arith.constant 0 : index
    %c0_16 = arith.constant 0 : index
    %19 = vector.load %arg7[%c0_15, %c0_16] : memref<25x1xf32, #tpu.memory_space<vmem>>, vector<25x1xf32>
    %20 = vector.broadcast %19 : vector<25x1xf32> to vector<25x128xf32>
    %21 = arith.addf %18, %20 : vector<25x128xf32>
    %cst_17 = arith.constant 0.000000e+00 : f32
    %22 = vector.broadcast %cst_17 : f32 to vector<25x128xf32>
    %23 = arith.maximumf %21, %22 : vector<25x128xf32>
    %c0_18 = arith.constant 0 : index
    %c0_19 = arith.constant 0 : index
    %24 = vector.load %arg8[%c0_18, %c0_19] : memref<2x25xbf16, #tpu.memory_space<vmem>>, vector<2x25xbf16>
    %25 = arith.truncf %23 : vector<25x128xf32> to vector<25x128xbf16>
    %cst_20 = arith.constant dense<0.000000e+00> : vector<2x128xf32>
    %26 = tpu.matmul %24, %25, %cst_20 {dimension_numbers = #tpu.dot_dimension_numbers<[1], [0], [0], [1], [0, 0, 1, 1], [], []>} : vector<2x25xbf16>, vector<25x128xbf16>, vector<2x128xf32> -> vector<2x128xf32>
    %c0_21 = arith.constant 0 : index
    %c0_22 = arith.constant 0 : index
    %27 = vector.load %arg9[%c0_21, %c0_22] : memref<2x1xf32, #tpu.memory_space<vmem>>, vector<2x1xf32>
    %28 = vector.broadcast %27 : vector<2x1xf32> to vector<2x128xf32>
    %29 = arith.addf %26, %28 : vector<2x128xf32>
    %30 = vector.extract_strided_slice %29 {offsets = [1, 0], sizes = [1, 128], strides = [1, 1]} : vector<2x128xf32> to vector<1x128xf32>
    %31 = vector.extract_strided_slice %29 {offsets = [0, 0], sizes = [1, 128], strides = [1, 1]} : vector<2x128xf32> to vector<1x128xf32>
    %32 = arith.subf %30, %31 : vector<1x128xf32>
    %33 = arith.negf %32 : vector<1x128xf32>
    %34 = math.exp %33 : vector<1x128xf32>
    %cst_23 = arith.constant 1.000000e+00 : f32
    %35 = vector.broadcast %cst_23 : f32 to vector<1x128xf32>
    %36 = arith.addf %35, %34 : vector<1x128xf32>
    %37 = arith.divf %35, %36 : vector<1x128xf32>
    %cst_24 = arith.constant 1.000000e+00 : f32
    %38 = vector.broadcast %cst_24 : f32 to vector<1x128xf32>
    %39 = arith.subf %38, %37 : vector<1x128xf32>
    %c0_25 = arith.constant 0 : index
    %c0_26 = arith.constant 0 : index
    %40 = vector.load %arg10[%c0_25, %c0_26] : memref<2x128xf32, #tpu.memory_space<vmem>>, vector<1x128xf32>
    tpu.vector_store %arg10[%c0_25, %c0_26], %39 {strides = array<i32>} : memref<2x128xf32, #tpu.memory_space<vmem>>, vector<1x128xf32>,
    %c1 = arith.constant 1 : index
    %c0_27 = arith.constant 0 : index
    %41 = vector.load %arg10[%c1, %c0_27] : memref<2x128xf32, #tpu.memory_space<vmem>>, vector<1x128xf32>
    tpu.vector_store %arg10[%c1, %c0_27], %37 {strides = array<i32>} : memref<2x128xf32, #tpu.memory_space<vmem>>, vector<1x128xf32>,
    return
  }
  func.func @transform_0(%arg0: i32) -> (i32, i32) {
    %c0_i32 = arith.constant 0 : i32
    %c0_i32_0 = arith.constant 0 : i32
    return %c0_i32, %arg0 : i32, i32
  }
  func.func @transform_1(%arg0: i32) -> (i32, i32) {
    %c0_i32 = arith.constant 0 : i32
    %c0_i32_0 = arith.constant 0 : i32
    %c0_i32_1 = arith.constant 0 : i32
    return %c0_i32, %c0_i32_0 : i32, i32
  }
  func.func @transform_2(%arg0: i32) -> (i32, i32) {
    %c0_i32 = arith.constant 0 : i32
    %c0_i32_0 = arith.constant 0 : i32
    %c0_i32_1 = arith.constant 0 : i32
    return %c0_i32, %c0_i32_0 : i32, i32
  }
  func.func @transform_3(%arg0: i32) -> (i32, i32) {
    %c0_i32 = arith.constant 0 : i32
    %c0_i32_0 = arith.constant 0 : i32
    %c0_i32_1 = arith.constant 0 : i32
    return %c0_i32, %c0_i32_0 : i32, i32
  }
  func.func @transform_4(%arg0: i32) -> (i32, i32) {
    %c0_i32 = arith.constant 0 : i32
    %c0_i32_0 = arith.constant 0 : i32
    %c0_i32_1 = arith.constant 0 : i32
    return %c0_i32, %c0_i32_0 : i32, i32
  }
  func.func @transform_5(%arg0: i32) -> (i32, i32) {
    %c0_i32 = arith.constant 0 : i32
    %c0_i32_0 = arith.constant 0 : i32
    %c0_i32_1 = arith.constant 0 : i32
    return %c0_i32, %c0_i32_0 : i32, i32
  }
  func.func @transform_6(%arg0: i32) -> (i32, i32) {
    %c0_i32 = arith.constant 0 : i32
    %c0_i32_0 = arith.constant 0 : i32
    %c0_i32_1 = arith.constant 0 : i32
    return %c0_i32, %c0_i32_0 : i32, i32
  }
  func.func @transform_7(%arg0: i32) -> (i32, i32) {
    %c0_i32 = arith.constant 0 : i32
    %c0_i32_0 = arith.constant 0 : i32
    %c0_i32_1 = arith.constant 0 : i32
    return %c0_i32, %c0_i32_0 : i32, i32
  }
  func.func @transform_8(%arg0: i32) -> (i32, i32) {
    %c0_i32 = arith.constant 0 : i32
    %c0_i32_0 = arith.constant 0 : i32
    %c0_i32_1 = arith.constant 0 : i32
    return %c0_i32, %c0_i32_0 : i32, i32
  }
  func.func @transform_9(%arg0: i32) -> (i32, i32) {
    %c0_i32 = arith.constant 0 : i32
    %c0_i32_0 = arith.constant 0 : i32
    return %c0_i32, %arg0 : i32, i32
  }
}

</mosaic_0001>

<bundles_post_ra>
// kernel: tpu_custom_call.1
= control target key start
LH: loop header
LB: loop body
LE: loop exit
PB: predicated region body
PF: predicated region fallthrough
CT: control target
= control target key end

     0   :  { %vm86_vm0 = vcmask 1043456   ;;  %vm87_vm1 = vcmask 1044480   ;;  %v534_v2 = vmov 65535   ;;  %vm79_vm2 = vcmask 72704   ;;  %s677_s0 = inlined_call_operand.vmem [shape: bf16[9,128], index: 0, kind: input, shape index: {}]   ;;  %s678_s1 = inlined_call_operand.vmem [shape: bf16[25,9], index: 1, kind: input, shape index: {}]   ;;  %s679_s2 = inlined_call_operand.vmem [shape: f32[25,1], index: 2, kind: input, shape index: {}]   ;;  %s680_s3 = inlined_call_operand.vmem [shape: bf16[25,25], index: 3, kind: input, shape index: {}]   ;;  %s681_s4 = inlined_call_operand.vmem [shape: f32[25,1], index: 4, kind: input, shape index: {}]   ;;  %s682_s5 = inlined_call_operand.vmem [shape: bf16[25,25], index: 5, kind: input, shape index: {}]   ;;  %s683_s6 = inlined_call_operand.vmem [shape: f32[25,1], index: 6, kind: input, shape index: {}]   ;;  %s684_s7 = inlined_call_operand.vmem [shape: bf16[2,25], index: 7, kind: input, shape index: {}]   ;;  %s685_s8 = inlined_call_operand.vmem [shape: f32[2,1], index: 8, kind: input, shape index: {}]   ;;  %s686_s9 = inlined_call_operand.hbm [shape: f32[2,128], index: 9, kind: output, shape index: {}]  }
   0x1   :  { %v499_v0 = vld [vmem:[%s677_s0] sm:$0x1f]   ;;  %v88_v3 = vsel %vm86_vm0, 4294967295, %v534_v2  ;;  %v535_v6 = vmov 0   ;;  %v42_v8 = vld [vmem:[%s679_s2 + $0x10] sm:$0xff]  ;;  %v41_v10 = vld [vmem:[%s679_s2 + $0x8] sm:$0xff] }
   0x2   :  { %v500_v1 = vld [vmem:[%s678_s1] sm:$0xff]   ;;  %v595_v4 = vsel %vm87_vm1, %v88_v3, 0  ;;  %497 = vset.pattern.permute.xlu0 %v535_v6  ;;  %498 = vset.pattern.permute.xlu1 %v535_v6  ;;  %v501_v9 = vld [vmem:[%s678_s1 + $0x8] sm:$0x1f]   ;;  %v43_v11 = vld [vmem:[%s679_s2 + $0x18] sm:$0x1] }
   0x3   :  { %464 = vmatprep.mubr.msk.bf16.mxu0 %vm79_vm2, %v500_v1  ;;  %v91_v5 = vand.u32 %v499_v0, %v595_v4  ;;  %v40_v7 = vld [vmem:[%s679_s2] sm:$0xff]  ;;  %56 = vperm.xlu1 %498, %v42_v8   ;;  %v153_v13 = vld [vmem:[%s681_s4 + $0x8] sm:$0xff] }
   0x4   :  { %46 = vperm.xlu0 %497, %v40_v7   ;;  %v152_v12 = vld [vmem:[%s681_s4] sm:$0xff] }
   0x5   :  { %462 = vmatprep.subr.bf16.mxu0 %v91_v5 }
   0x6   :  { %463 = vmatpush3.bf16.msra.mxu0 %v91_v5 }
   0x7   :  { %61 = vperm.xlu1 %498, %v43_v11  }
   0x8   :  { %51 = vperm.xlu0 %497, %v41_v10  }
   0x9   :  { %465 = vmatmul.mubr.msk.bf16.vlgmr.msra.gmra.mrb[0].mxu0 %vm79_vm2, %v501_v9 }
   0xa   :  { %14 = vsyncpa [#allocation3], 0  ;;  %v154_v14 = vld [vmem:[%s681_s4 + $0x10] sm:$0xff]  ;;  %v155_v15 = vld [vmem:[%s681_s4 + $0x18] sm:$0x1]  ;;  %vm186_vm3 = vcmask 203776  }
   0xb   :  { %163 = vperm.xlu1 %498, %v153_v13   ;;  %v255_v16 = vld [vmem:[%s683_s6] sm:$0xff]  ;;  %v256_v17 = vld [vmem:[%s683_s6 + $0x8] sm:$0xff]  ;;  %v257_v18 = vld [vmem:[%s683_s6 + $0x10] sm:$0xff]  ;;  %v536_v63 = vmov 0.0   ;;  %vm537_vm4 = vmmov 0   ;;  %s538_s21 = smov [#allocation2]  }
   0xc   :  { %158 = vperm.xlu0 %497, %v152_v12   ;;  %v258_v19 = vld [vmem:[%s683_s6 + $0x18] sm:$0x1]  ;;  %v354_v20 = vld [vmem:[%s685_s8] sm:$0x3]  ;;  %v503_v41 = vld [vmem:[%s680_s3 + $0x8] sm:$0x1f]  }
   0xd   :  { %v502_v21 = vld [vmem:[%s680_s3] sm:$0xff]   ;;  %v505_v62 = vld [vmem:[%s682_s5 + $0x8] sm:$0x1f]   ;;  %s425_s22 = sshll.u32 %s538_s21, 4  ;;  %s426_s22 = int_to_ptr.vmem [resolvable:$true] %s425_s22 }
   0xe   :  { %472 = vmatprep.mubr.msk.bf16.mxu1 %vm186_vm3, %v502_v21  ;;  %v504_v42 = vld [vmem:[%s682_s5] sm:$0xff]   ;;  %p515_p1 = scmp.lt.s32.totalorder %s426_s22, %s426_s22 }
   0xf   :  { %173 = vperm.xlu1 %498, %v155_v15   ;;  %480 = vmatprep.mubr.msk.bf16.mxu0 %vm186_vm3, %v504_v42 }
  0x10   :  { %168 = vperm.xlu0 %497, %v154_v14  }
  0x13   :  { %266 = vperm.xlu1 %498, %v256_v17  }
  0x14   :  { %261 = vperm.xlu0 %497, %v255_v16  }
  0x17   :  { %276 = vperm.xlu1 %498, %v258_v19  }
  0x18   :  { %271 = vperm.xlu0 %497, %v257_v18  }
  0x1c   :  { %357 = vperm.xlu0 %497, %v354_v20   ;;  %v351_v20 = vld [vmem:[%s684_s7] sm:$0x1]  ;;  %s510_s7 = scalar_lea.vmem %s426_s22, 32 }
  0x1d   :  { %p511_p0 = scmp.ne.s32.totalorder %s426_s22, %s510_s7  ;;  %p516_p2 = scmp.lt.s32.totalorder %s510_s7, %s510_s7 }
  0x1f   :  { %p517_p3 = por %p516_p2, %p515_p1 }
  0x21   :  { %p518_p4 = pnand %p517_p3, %p511_p0 }
  0x82   :  { %v57_v22 = vpop.permute.xlu1 %56 }
  0x83   :  { %v47_v23 = vpop.permute.xlu0 %46 }
  0x86   :  { %v62_v27 = vpop.permute.xlu1 %61 }
  0x87   :  { %v52_v30 = vpop.permute.xlu0 %51 }
  0x8a   :  { %v164_v44 = vpop.permute.xlu1 %163 }
  0x8b   :  { %v159_v43 = vpop.permute.xlu0 %158 }
  0x8e   :  { %v174_v49 = vpop.permute.xlu1 %173 }
  0x8f   :  { %v169_v45 = vpop.permute.xlu0 %168 }
  0x92   :  { %v267_v1 = vpop.permute.xlu1 %266 }
  0x93   :  { %v262_v0 = vpop.permute.xlu0 %261 }
  0x96   :  { %v277_v7 = vpop.permute.xlu1 %276 }
  0x97   :  { %v272_v2 = vpop.permute.xlu0 %271 }
  0x9b   :  { %v358_v21 = vpop.permute.xlu0 %357 }
  0xdc   :  { %v466_v24 = vpop.f32.mrb[0].mxu0 }
  0xdd   :  { %v136_v25 = vadd.f32 %v466_v24, %v57_v22  ;;  %v127_v26 = vpop.f32.mrb[1].mxu0 }
  0xde   :  { %v128_v28 = vadd.f32 %v127_v26, %v47_v23  ;;  %v467_v29 = vpop.f32.mrb[2].mxu0 }
  0xdf   :  { %v139_v31 = vadd.f32 %v467_v29, %v62_v27  ;;  %v130_v32 = vpop.f32.mrb[3].mxu0  ;;  %v144_v34 = vmax.f32 %v136_v25, 0.0 }
  0xe0   :  { %v131_v33 = vadd.f32 %v130_v32, %v52_v30  ;;  %v142_v36 = vmax.f32 %v128_v28, 0.0 }
  0xe1   :  { %v145_v35 = vmax.f32 %v139_v31, 0.0 }
  0xe2   :  { %v143_v37 = vmax.f32 %v131_v33, 0.0 }
  0xe3   :  { %v151_v38 = vpack.c.bf16 %v145_v35, %v144_v34 }
  0xe4   :  { %v150_v39 = vpack.c.bf16 %v143_v37, %v142_v36 }
  0xe5   :  { %v194_v40 = vand.u32 %v151_v38, %v595_v4 }
  0xe6   :  { %468 = vmatprep.subr.bf16.mxu1 %v150_v39 }
  0xe7   :  { %469 = vmatpush3.bf16.msra.mxu1 %v150_v39 }
  0xe8   :  { %470 = vmatprep.subr.bf16.mxu1 %v194_v40 }
  0xeb   :  { %471 = vmatpush3.bf16.msra.mxu1 %v194_v40 }
  0xec   :  { %484 = vmatprep.subr.bf16.mxu1 %v536_v63 }
  0xee   :  { %473 = vmatmul.mubr.msk.bf16.vlgmr.msra.gmra.mrb[0].mxu1 %vm186_vm3, %v503_v41 }
  0xef   :  { %488 = vmatprep.mubr.msk.bf16.mxu1 %vm537_vm4, %v536_v63 }
 0x1c1   :  { %v474_v46 = vpop.f32.mrb[0].mxu1 }
 0x1c2   :  { %v239_v47 = vadd.f32 %v474_v46, %v169_v45  ;;  %v230_v48 = vpop.f32.mrb[1].mxu1 }
 0x1c3   :  { %v231_v50 = vadd.f32 %v230_v48, %v159_v43  ;;  %v475_v51 = vpop.f32.mrb[2].mxu1 }
 0x1c4   :  { %v242_v52 = vadd.f32 %v475_v51, %v174_v49  ;;  %v233_v53 = vpop.f32.mrb[3].mxu1  ;;  %v247_v55 = vmax.f32 %v239_v47, 0.0 }
 0x1c5   :  { %v234_v54 = vadd.f32 %v233_v53, %v164_v44  ;;  %v245_v57 = vmax.f32 %v231_v50, 0.0 }
 0x1c6   :  { %v248_v56 = vmax.f32 %v242_v52, 0.0 }
 0x1c7   :  { %v246_v58 = vmax.f32 %v234_v54, 0.0 }
 0x1c8   :  { %v254_v59 = vpack.c.bf16 %v248_v56, %v247_v55 }
 0x1c9   :  { %v253_v60 = vpack.c.bf16 %v246_v58, %v245_v57 }
 0x1ca   :  { %v296_v61 = vand.u32 %v254_v59, %v595_v4 }
 0x1cb   :  { %476 = vmatprep.subr.bf16.mxu0 %v253_v60 }
 0x1cc   :  { %477 = vmatpush3.bf16.msra.mxu0 %v253_v60 }
 0x1cd   :  { %478 = vmatprep.subr.bf16.mxu0 %v296_v61 }
 0x1d0   :  { %479 = vmatpush3.bf16.msra.mxu0 %v296_v61 }
 0x1d3   :  { %481 = vmatmul.mubr.msk.bf16.vlgmr.msra.gmra.mrb[4].mxu0 %vm186_vm3, %v505_v62 }
 0x2a6   :  { %v482_v3 = vpop.f32.mrb[4].mxu0 }
 0x2a7   :  { %v341_v5 = vadd.f32 %v482_v3, %v272_v2  ;;  %v332_v6 = vpop.f32.mrb[5].mxu0 }
 0x2a8   :  { %v333_v8 = vadd.f32 %v332_v6, %v262_v0  ;;  %v483_v9 = vpop.f32.mrb[6].mxu0 }
 0x2a9   :  { %v344_v10 = vadd.f32 %v483_v9, %v277_v7  ;;  %v335_v11 = vpop.f32.mrb[7].mxu0  ;;  %v349_v13 = vmax.f32 %v341_v5, 0.0 }
 0x2aa   :  { %v336_v12 = vadd.f32 %v335_v11, %v267_v1  ;;  %v347_v15 = vmax.f32 %v333_v8, 0.0 }
 0x2ab   :  { %v350_v14 = vmax.f32 %v344_v10, 0.0 }
 0x2ac   :  { %v348_v16 = vmax.f32 %v336_v12, 0.0 }
 0x2ad   :  { %v353_v17 = vpack.c.bf16 %v350_v14, %v349_v13 }
 0x2ae   :  { %v352_v18 = vpack.c.bf16 %v348_v16, %v347_v15 }
 0x2af   :  { %v364_v19 = vand.u32 %v353_v17, %v595_v4 }
 0x2b0   :  { %485 = vmatpush3.bf16.msra.mxu1 %v352_v18 }
 0x2b1   :  { %486 = vmatprep.subr.bf16.mxu1 %v536_v63 }
 0x2b4   :  { %487 = vmatpush3.bf16.msra.mxu1 %v364_v19 }
 0x2b7   :  { %489 = vmatmul.mubr.msk.bf16.vlgmr.msra.gmra.mrb[4].mxu1 %vm186_vm3, %v351_v20 }
 0x38a   :  { %v400_v22 = vpop.f32.mrb[4].mxu1 }
 0x38b   :  { %v401_v23 = vadd.f32 %v400_v22, %v358_v21  ;;  %v490_v24 = vpop.f32.mrb[5].mxu1 }
 0x38c   :  { %v403_v25 = vpop.f32.mrb[6].mxu1 }
 0x38d   :  { %v407_v26 = vrot.slane %v401_v23, 7  ;;  %v491_v27 = vpop.f32.mrb[7].mxu1 }
 0x38f   :  { %v409_v28 = vsub.f32 %v401_v23, %v407_v26 }
 0x391   :  { %v447_v29 = vmul.f32 -1.442695, %v409_v28 }
 0x393   :  { %506 = vpow2.f32 %v447_v29 }
 0x39d   :  { %v507_v30 = vpop.eup %506 }
 0x39e   :  { %v413_v31 = vadd.f32 1.0, %v507_v30 }
 0x3a0   :  { %508 = vrcp.f32 %v413_v31 }
 0x3aa   :  { %v509_v4 = vpop.eup %508 }
 0x3ab   :  { %418 = vst [vmem:[#allocation2] sm:$0x2] %v509_v4  ;;  %v416_v32 = vsub.f32 1.0, %v509_v4 }
 0x3ad   :  { %417 = vst [vmem:[#allocation2 - $0x1] sm:$0x2] %v416_v32 }
 0x3ae   :  { %521 = shalt.err (!%p518_p4)
}
 0x3af   :  { %s522_s25 = scalar_lea.hbm %s686_s9, 32 }
 0x3b0   :  { %p523_p5 = scmp.ne.s32.totalorder %s686_s9, %s522_s25  ;;  %p526_p6 = scmp.lt.u32.totalorder %s522_s25, %s686_s9 }
 0x3b2   :  { %p528_p7 = pnand %p526_p6, %p523_p5 }
 0x3b4   :  { %531 = shalt.err (!%p528_p7)
}
 0x3b5   :  { %428 = dma.vmem_to_hbm [thread:$0]  %s426_s22, 32, %s686_s9, [#allocation3]  }
 0x3b6   :  { %532 = dma.done.wait [#allocation3], 32  }
 0x3b7   :  { %533 = vsyncadd [#allocation3], 4294967264 }
 0x3b8   :  { %432 = vsyncpa [#allocation3], 1 }

</bundles_post_ra>
